<compile_context>
chip_gen: v7x
topology: tpu7x:2x2x1
jax: 0.10.0
libtpu: 0.0.40
codegen_flags: <defaults>
</compile_context>

<pallas_src>
import math

import jax
import jax.numpy as jnp
from jax.experimental import pallas as pl
from jax.experimental.pallas import tpu as pltpu


def _round_up(x: int, m: int) -> int:
    return (x + m - 1) // m * m


def _cdiv(a: int, b: int) -> int:
    return (a + b - 1) // b


def lstm_cell_kernel(xh_ref, c0_ref, w_ref, b_ref, h_ref, c_ref):
    """One (hidden-column tile, batch tile) block of the LSTM cell.

    xh_ref : (TB, Kp)   bf16  [x | h0], zero padded
    c0_ref : (TB, Tn)   f32
    w_ref  : (Kp, 4*Tn) bf16  [Wf_j | Wi_j | Wc_j | Wo_j]; sigmoid-gate
                              columns pre-scaled by 0.5
    b_ref  : (1, 4*Tn)  f32   matching layout / scaling
    h_ref  : (TB, Tn)   bf16
    c_ref  : (TB, Tn)   f32
    """
    # Single bf16 MXU pass with f32 accumulation.
    z = jnp.dot(xh_ref[...], w_ref[...], preferred_element_type=jnp.float32)
    z = z + b_ref[...]                                  # (TB,4Tn) += (1,4Tn)

    tn = c0_ref.shape[-1]
    # sigmoid(x) = 0.5*(1 + tanh(x/2)); the /2 was folded into W/b at pack
    # time, so each sigmoid gate costs 1 EUP tanh + cheap VALU mul/add.
    f = 0.5 * (1.0 + jnp.tanh(z[:, 0 * tn:1 * tn]))
    i = 0.5 * (1.0 + jnp.tanh(z[:, 1 * tn:2 * tn]))
    g = jnp.tanh(z[:, 2 * tn:3 * tn])
    o = 0.5 * (1.0 + jnp.tanh(z[:, 3 * tn:4 * tn]))

    c = f * c0_ref[...] + i * g                         # f32 state math
    c_ref[...] = c
    h_ref[...] = (o * jnp.tanh(c)).astype(h_ref.dtype)  # bf16 writeback


def lstm_cell_forward(x, w, b, hc0=None):
    """LSTMCell forward.

    x   : (B, In) or (In,)
    w   : (In+H, 4H) fused weight, gate order [forget|input|candidates|output]
    b   : (4H,)      fused bias, same gate order
    hc0 : optional (h0, c0), each (B, H) / (H,); zeros if None (as in the
          PyTorch module)

    Returns (h, c); h is bfloat16 (downstream matmuls consume bf16), c is f32.
    """
    H = w.shape[1] // 4
    In = w.shape[0] - H

    if x.ndim == 1:  # unbatched path: trivial wrap around the batched kernel
        h0c0 = None if hc0 is None else (hc0[0][None], hc0[1][None])
        h, c = lstm_cell_forward(x[None], w, b, h0c0)
        return h[0], c[0]

    B = x.shape[0]
    f32, bf16 = jnp.float32, jnp.bfloat16
    if hc0 is None:
        h0 = jnp.zeros((B, H), f32)
        c0 = jnp.zeros((B, H), f32)
    else:
        h0, c0 = hc0

    # ---- lane-aligned padded sizes & tiling --------------------------------
    K = In + H
    Kp = _round_up(K, 128)                 # fused contraction dim
    Hp = _round_up(H, 128)                 # padded hidden dim

    # Hidden-column tile Tn: largest 128-multiple divisor of Hp whose resident
    # weight block (Kp x 4*Tn bf16, single-buffered) fits ~12 MiB, so weights
    # stay VMEM-resident per tile even on v7x (64 MiB physical VMEM).
    weight_budget = 12 * 2**20
    n128 = Hp // 128
    Tn = 128
    for m in range(n128, 0, -1):
        if n128 % m == 0 and Kp * (4 * m * 128) * 2 <= weight_budget:
            Tn = m * 128
            break
    n_n = Hp // Tn

    # Batch tile TB: >= 2 tiles when possible (so the "parallel" axes shard
    # over both v7x TensorCores), capped so the f32 gate block (TB, 4*Tn)
    # stays ~2 MiB, and sized to minimize padded rows.  16-row granularity
    # keeps bf16 tiles native.
    row_g = 8 if B <= 8 else 16
    Bpg = _round_up(B, row_g)
    max_tb = max(row_g, min(512, ((2 * 2**20) // (16 * Tn)) // row_g * row_g))
    if Bpg <= row_g:
        TB = Bpg
    else:
        n_bt = max(2, _cdiv(Bpg, max_tb))
        TB = _round_up(_cdiv(Bpg, n_bt), row_g)
    Bp = _round_up(B, TB)

    # ---- pack operands ------------------------------------------------------
    # Fused activation [x | h0] -> one padded bf16 buffer, one MXU K-pass.
    xh_p = jnp.zeros((Bp, Kp), bf16)
    xh_p = xh_p.at[:B, :In].set(x.astype(bf16))
    xh_p = xh_p.at[:B, In:K].set(h0.astype(bf16))
    c0_p = jnp.zeros((Bp, Hp), f32).at[:B, :H].set(c0.astype(f32))

    # Weight/bias: hidden tile j gets columns [Wf_j|Wi_j|Wc_j|Wo_j], each Tn
    # wide and 128-aligned.  Sigmoid gates (f, i, o) pre-scaled by 0.5 for the
    # tanh-based sigmoid in the kernel.
    gate_scale = (0.5, 0.5, 1.0, 0.5)      # forget, input, candidates, output
    w_p = jnp.zeros((Kp, n_n * 4 * Tn), bf16)
    b_p = jnp.zeros((1, n_n * 4 * Tn), f32)
    for j in range(n_n):
        col0 = j * Tn
        ncols = max(0, min(Tn, H - col0))
        for g in range(4):
            dst = j * 4 * Tn + g * Tn
            src = g * H + col0
            w_p = w_p.at[:K, dst:dst + ncols].set(
                (w[:, src:src + ncols] * gate_scale[g]).astype(bf16))
            b_p = b_p.at[0, dst:dst + ncols].set(
                (b[src:src + ncols] * gate_scale[g]).astype(f32))

    # ---- grid & specs -------------------------------------------------------
    grid = (n_n, Bp // TB)                 # hidden tile OUTER, batch INNER:
                                           # weight block reused across all
                                           # batch tiles before it changes.
    act_map = lambda j, i: (i, 0)          # xh: batch tile only
    st_map = lambda j, i: (i, j)           # c0 / h / c: (batch, hidden) tile
    wgt_map = lambda j, i: (0, j)          # weight / bias: hidden tile only
    single = pl.Buffered(buffer_count=1)   # constant along the batch axis

    # Explicit VMEM budget from the actual footprint (+2x headroom).
    footprint = (
        Kp * 4 * Tn * 2                    # weight block (bf16, 1-buffered)
        + 4 * Tn * 4                       # bias block
        + 2 * TB * Kp * 2                  # xh tile (double-buffered)
        + 2 * TB * Tn * 4                  # c0 tile
        + 2 * TB * Tn * 2                  # h tile (bf16)
        + 2 * TB * Tn * 4                  # c tile
        + 2 * TB * 4 * Tn * 4)             # z + elementwise temporaries
    vmem_limit = int(min(max(2 * footprint, 32 * 2**20), 100 * 2**20))

    h_p, c_p = pl.pallas_call(
        lstm_cell_kernel,
        out_shape=(
            jax.ShapeDtypeStruct((Bp, Hp), bf16),   # h (bf16 writeback)
            jax.ShapeDtypeStruct((Bp, Hp), f32),    # c
        ),
        grid=grid,
        in_specs=[
            pl.BlockSpec((TB, Kp), act_map),                            # xh
            pl.BlockSpec((TB, Tn), st_map),                             # c0
            pl.BlockSpec((Kp, 4 * Tn), wgt_map, pipeline_mode=single),  # W
            pl.BlockSpec((1, 4 * Tn), wgt_map, pipeline_mode=single),   # b
        ],
        out_specs=(
            pl.BlockSpec((TB, Tn), st_map),                             # h
            pl.BlockSpec((TB, Tn), st_map),                             # c
        ),
        # New cell state c (output 1) overwrites the padded c0 (input 1).
        input_output_aliases={1: 1},
        compiler_params=pltpu.CompilerParams(
            dimension_semantics=("parallel", "parallel"),
            vmem_limit_bytes=vmem_limit),
    )(xh_p, c0_p, w_p, b_p)

    return h_p[:B, :H], c_p[:B, :H]


def reference_lstm_cell(x, w, b, hc0):
    """Pure-JAX reference with matching bf16-matmul / f32-math semantics."""
    h0, c0 = hc0
    bf16 = jnp.bfloat16
    H = w.shape[1] // 4
    xh = jnp.concatenate([x, h0], axis=-1).astype(bf16)
    z = jnp.dot(xh, w.astype(bf16), preferred_element_type=jnp.float32)
    z = z + b.astype(jnp.float32)[None, :]
    f = jax.nn.sigmoid(z[:, 0 * H:1 * H])
    i = jax.nn.sigmoid(z[:, 1 * H:2 * H])
    g = jnp.tanh(z[:, 2 * H:3 * H])
    o = jax.nn.sigmoid(z[:, 3 * H:4 * H])
    c = f * c0 + i * g
    h = o * jnp.tanh(c)
    return h, c


if __name__ == "__main__":
    batch = 32
    inputs_dim = 16
    hidden_dim = 32
    D = inputs_dim + hidden_dim

    key = jax.random.PRNGKey(0)
    kx, kh, kc, kw, kb = jax.random.split(key, 5)

    x = jax.random.normal(kx, (batch, inputs_dim), dtype=jnp.float32)
    h0 = jax.random.normal(kh, (batch, hidden_dim), dtype=jnp.float32)
    c0 = jax.random.normal(kc, (batch, hidden_dim), dtype=jnp.float32)

    # Deterministic synthetic parameters for the module's four
    # Dense(In+H -> H) layers, fused column-wise as [forget|input|cand|output].
    bound = 1.0 / math.sqrt(D)
    w = jax.random.uniform(kw, (D, 4 * hidden_dim), jnp.float32, -bound, bound)
    b = jax.random.uniform(kb, (4 * hidden_dim,), jnp.float32, -bound, bound)

    fwd = jax.jit(lstm_cell_forward)
    h, c = fwd(x, w, b, (h0, c0))
    jax.block_until_ready((h, c))

    h_ref, c_ref = reference_lstm_cell(x, w, b, (h0, c0))
    assert h.shape == (batch, hidden_dim) and c.shape == (batch, hidden_dim)
    assert h.dtype == jnp.bfloat16 and c.dtype == jnp.float32
    assert jnp.allclose(h.astype(jnp.float32), h_ref, atol=1e-2, rtol=1e-2)
    assert jnp.allclose(c, c_ref, atol=5e-3, rtol=5e-3)

    print("KERNEL_OK")
</pallas_src>

<mosaic_0001>
module attributes {stable_mosaic.version = 11 : i64} {
  func.func @lstm_cell_kernel(%arg0: i32, %arg1: i32, %arg2: memref<16x128xbf16, #tpu.memory_space<vmem>>, %arg3: memref<16x128xf32, #tpu.memory_space<vmem>>, %arg4: memref<128x512xbf16, #tpu.memory_space<vmem>>, %arg5: memref<1x512xf32, #tpu.memory_space<vmem>>, %arg6: memref<16x128xbf16, #tpu.memory_space<vmem>>, %arg7: memref<16x128xf32, #tpu.memory_space<vmem>>) attributes {dimension_semantics = [#tpu.dimension_semantics<parallel>, #tpu.dimension_semantics<parallel>], iteration_bounds = array<i64: 1, 2>, scalar_prefetch = 0 : i64, scratch_operands = 0 : i64, tpu.core_type = #tpu.core_type<tc>, window_params = [{transform_indices = @transform_0, window_bounds = array<i64: 16, 128>}, {transform_indices = @transform_1, window_bounds = array<i64: 16, 128>}, {pipeline_mode = #tpu.pipeline_mode<synchronous>, transform_indices = @transform_2, window_bounds = array<i64: 128, 512>}, {pipeline_mode = #tpu.pipeline_mode<synchronous>, transform_indices = @transform_3, window_bounds = array<i64: 1, 512>}, {transform_indices = @transform_4, window_bounds = array<i64: 16, 128>}, {transform_indices = @transform_5, window_bounds = array<i64: 16, 128>}]} {
    %c0 = arith.constant 0 : index
    %c0_0 = arith.constant 0 : index
    %0 = vector.load %arg2[%c0, %c0_0] : memref<16x128xbf16, #tpu.memory_space<vmem>>, vector<16x128xbf16>
    %c0_1 = arith.constant 0 : index
    %c0_2 = arith.constant 0 : index
    %1 = vector.load %arg4[%c0_1, %c0_2] : memref<128x512xbf16, #tpu.memory_space<vmem>>, vector<128x512xbf16>
    %cst = arith.constant dense<0.000000e+00> : vector<16x512xf32>
    %2 = tpu.matmul %0, %1, %cst {dimension_numbers = #tpu.dot_dimension_numbers<[1], [0], [0], [1], [0, 0, 1, 1], [], []>} : vector<16x128xbf16>, vector<128x512xbf16>, vector<16x512xf32> -> vector<16x512xf32>
    %c0_3 = arith.constant 0 : index
    %c0_4 = arith.constant 0 : index
    %3 = vector.load %arg5[%c0_3, %c0_4] : memref<1x512xf32, #tpu.memory_space<vmem>>, vector<1x512xf32>
    %4 = vector.broadcast %3 : vector<1x512xf32> to vector<16x512xf32>
    %5 = arith.addf %2, %4 : vector<16x512xf32>
    %6 = vector.extract_strided_slice %5 {offsets = [0, 0], sizes = [16, 128], strides = [1, 1]} : vector<16x512xf32> to vector<16x128xf32>
    %7 = math.tanh %6 : vector<16x128xf32>
    %cst_5 = arith.constant 1.000000e+00 : f32
    %8 = vector.broadcast %cst_5 : f32 to vector<16x128xf32>
    %9 = arith.addf %8, %7 : vector<16x128xf32>
    %cst_6 = arith.constant 5.000000e-01 : f32
    %10 = vector.broadcast %cst_6 : f32 to vector<16x128xf32>
    %11 = arith.mulf %10, %9 : vector<16x128xf32>
    %12 = vector.extract_strided_slice %5 {offsets = [0, 128], sizes = [16, 128], strides = [1, 1]} : vector<16x512xf32> to vector<16x128xf32>
    %13 = math.tanh %12 : vector<16x128xf32>
    %cst_7 = arith.constant 1.000000e+00 : f32
    %14 = vector.broadcast %cst_7 : f32 to vector<16x128xf32>
    %15 = arith.addf %14, %13 : vector<16x128xf32>
    %cst_8 = arith.constant 5.000000e-01 : f32
    %16 = vector.broadcast %cst_8 : f32 to vector<16x128xf32>
    %17 = arith.mulf %16, %15 : vector<16x128xf32>
    %18 = vector.extract_strided_slice %5 {offsets = [0, 256], sizes = [16, 128], strides = [1, 1]} : vector<16x512xf32> to vector<16x128xf32>
    %19 = math.tanh %18 : vector<16x128xf32>
    %20 = vector.extract_strided_slice %5 {offsets = [0, 384], sizes = [16, 128], strides = [1, 1]} : vector<16x512xf32> to vector<16x128xf32>
    %21 = math.tanh %20 : vector<16x128xf32>
    %cst_9 = arith.constant 1.000000e+00 : f32
    %22 = vector.broadcast %cst_9 : f32 to vector<16x128xf32>
    %23 = arith.addf %22, %21 : vector<16x128xf32>
    %cst_10 = arith.constant 5.000000e-01 : f32
    %24 = vector.broadcast %cst_10 : f32 to vector<16x128xf32>
    %25 = arith.mulf %24, %23 : vector<16x128xf32>
    %c0_11 = arith.constant 0 : index
    %c0_12 = arith.constant 0 : index
    %26 = vector.load %arg3[%c0_11, %c0_12] : memref<16x128xf32, #tpu.memory_space<vmem>>, vector<16x128xf32>
    %27 = arith.mulf %11, %26 : vector<16x128xf32>
    %28 = arith.mulf %17, %19 : vector<16x128xf32>
    %29 = arith.addf %27, %28 : vector<16x128xf32>
    %c0_13 = arith.constant 0 : index
    %c0_14 = arith.constant 0 : index
    %30 = vector.load %arg7[%c0_13, %c0_14] : memref<16x128xf32, #tpu.memory_space<vmem>>, vector<16x128xf32>
    tpu.vector_store %arg7[%c0_13, %c0_14], %29 {strides = array<i32>} : memref<16x128xf32, #tpu.memory_space<vmem>>, vector<16x128xf32>,
    %31 = math.tanh %29 : vector<16x128xf32>
    %32 = arith.mulf %25, %31 : vector<16x128xf32>
    %33 = arith.truncf %32 : vector<16x128xf32> to vector<16x128xbf16>
    %c0_15 = arith.constant 0 : index
    %c0_16 = arith.constant 0 : index
    %34 = vector.load %arg6[%c0_15, %c0_16] : memref<16x128xbf16, #tpu.memory_space<vmem>>, vector<16x128xbf16>
    tpu.vector_store %arg6[%c0_15, %c0_16], %33 {strides = array<i32>} : memref<16x128xbf16, #tpu.memory_space<vmem>>, vector<16x128xbf16>,
    return
  }
  func.func @transform_0(%arg0: i32, %arg1: i32) -> (i32, i32) {
    %c0_i32 = arith.constant 0 : i32
    %c0_i32_0 = arith.constant 0 : i32
    return %arg1, %c0_i32 : i32, i32
  }
  func.func @transform_1(%arg0: i32, %arg1: i32) -> (i32, i32) {
    %c0_i32 = arith.constant 0 : i32
    return %arg1, %arg0 : i32, i32
  }
  func.func @transform_2(%arg0: i32, %arg1: i32) -> (i32, i32) {
    %c0_i32 = arith.constant 0 : i32
    %c0_i32_0 = arith.constant 0 : i32
    return %c0_i32, %arg0 : i32, i32
  }
  func.func @transform_3(%arg0: i32, %arg1: i32) -> (i32, i32) {
    %c0_i32 = arith.constant 0 : i32
    %c0_i32_0 = arith.constant 0 : i32
    return %c0_i32, %arg0 : i32, i32
  }
  func.func @transform_4(%arg0: i32, %arg1: i32) -> (i32, i32) {
    %c0_i32 = arith.constant 0 : i32
    return %arg1, %arg0 : i32, i32
  }
  func.func @transform_5(%arg0: i32, %arg1: i32) -> (i32, i32) {
    %c0_i32 = arith.constant 0 : i32
    return %arg1, %arg0 : i32, i32
  }
}

</mosaic_0001>

<bundles_post_ra>
// kernel: lstm_cell_forward.1
= control target key start
LH: loop header
LB: loop body
LE: loop exit
PB: predicated region body
PF: predicated region fallthrough
CT: control target
= control target key end

     0   :  { %11 = vsyncpa [#allocation3], 0  ;;  %s1388_s0 = inlined_call_operand.vmem [shape: bf16[32,128], index: 0, kind: input, shape index: {}]   ;;  %s1389_s1 = inlined_call_operand.vmem [shape: f32[32,128], index: 1, kind: input, shape index: {}, may-alias: {1,5}]   ;;  %s1390_s2 = inlined_call_operand.vmem [shape: bf16[128,512], index: 2, kind: input, shape index: {}]   ;;  %s1391_s3 = inlined_call_operand.vmem [shape: f32[1,512], index: 3, kind: input, shape index: {}]   ;;  %s1392_s4 = inlined_call_operand.hbm [shape: bf16[32,128], index: 4, kind: output, shape index: {0}]   ;;  %s1393_s5 = inlined_call_operand.vmem [shape: f32[32,128], index: 5, kind: output, shape index: {1}, may-alias: {1,5}]  }
   0x1   :  { %13 = vsyncpa [#allocation3 + $0x1], 0  ;;  %s1165_s18 = smov 0   ;;  %s1167_s19 = smov 0  }
   0x2   :  { %s1169_s20 = smov 0   ;;  %s1171_s21 = smov 0  }
   0x3   :  { %s1173_s22 = smov 0   ;;  %s1175_s23 = smov 0  }
   0x4 LB: > { %s862_s24 = sadd.s32 4294967295, %s1129_s23   ;;  %s863_s25 = sadd.s32 4294967294, %s1129_s23   ;;  %s1129_s23 = sphi %s1175_s23, %s19_s23   ;;  %s1125_s22 = sphi %s1173_s22, %s1400_s22   ;;  %s1121_s21 = sphi %s1171_s21, %s1399_s21   ;;  %s1117_s20 = sphi %s1169_s20, %s1398_s20   ;;  %s1113_s19 = sphi %s1167_s19, %s1397_s19   ;;  %s1109_s18 = sphi %s1165_s18, %s1396_s18  }
   0x5   : > { %s28_s26 = sadd.s32 1, %s1125_s22  ;;  %s146_s27 = sadd.s32 1, %s1117_s20 }
   0x6   : > { %p29_p0 = scmp.ge.s32.totalorder %s28_s26, 2  ;;  %p156_p1 = scmp.ne.s32.totalorder %s1117_s20, %s1113_s19 }
   0x7   : > { %p157_p2 = scmp.eq.s32.totalorder %s862_s24, 1  ;;  %p162_p3 = scmp.ne.s32.totalorder %s1113_s19, %s1109_s18 }
   0x8   : > { %s1402_s26 = smov (%p29_p0, %s28_s26), 0  ;;  %p163_p5 = scmp.eq.s32.totalorder %s863_s25, 1 }
   0x9   : > { %p1205_p4 = por %p157_p2, %p156_p1  ;;  %s141_s29 = ssub.s32 %s1125_s22, %s1402_s26 }
   0xa   : > { %p868_p6 = scmp.ge.s32.totalorder %s1129_s23, 1  ;;  %p144_p7 = scmp.eq.s32.totalorder %s141_s29, 0 }
   0xb   : > { %p1212_p8 = por %p163_p5, %p162_p3  ;;  %p247_p9 = scmp.lt.s32.totalorder %s1129_s23, 3 }
   0xc   : > { %s1218_s6 = scalar_select %p144_p7, %s1117_s20, %s146_s27  }
   0xd   : > { %p248_p10 = pnand %p868_p6, %p247_p9 }
   0xe   : > { %v982_v0 = vld [vmem:[%s1390_s2 + $0x4] ss:$16 sps:$4 sm:$0xff] (!%p248_p10)   ;;  %v984_v1 = vld [vmem:[%s1390_s2] ss:$16 sps:$4 sm:$0xff] (!%p248_p10)   ;;  %v1131_v2 = vmov (!%p248_p10), 0   ;;  %s870_s10 = sshll.u32 (!%p248_p10), %s1121_s21, 1  ;;  %v373_v34 = vlaneseq (!%p248_p10) }
   0xf   : > { %251 = sbr.rel (%p248_p10) target bundleno = 315 (0x13b), region = 36  ;;  %591 = vmatprep.mubr.bf16.mxu0 (!%p248_p10), %v1131_v2  ;;  %634 = vmatprep.mubr.bf16.mxu1 (!%p248_p10), %v1131_v2  ;;  %v985_v3 = vld [vmem:[%s1390_s2 + $0xc] ss:$16 sps:$4 sm:$0xff] (!%p248_p10)   ;;  %v987_v4 = vld [vmem:[%s1390_s2 + $0x8] ss:$16 sps:$4 sm:$0xff] (!%p248_p10)   ;;  %p301_p11 = scmp.lt.s32.totalorder (!%p248_p10), %s870_s10, 3 }
  0x10   : > { %559 = vmatprep.subr.bf16.mxu0 (!%p248_p10), %v982_v0  ;;  %v988_v5 = vld [vmem:[%s1390_s2 + $0x24] ss:$16 sps:$4 sm:$0xff] (!%p248_p10)   ;;  %v990_v6 = vld [vmem:[%s1390_s2 + $0x20] ss:$16 sps:$4 sm:$0xff] (!%p248_p10)   ;;  %602 = vmatprep.subr.bf16.mxu1 (!%p248_p10), %v985_v3  ;;  %v991_v7 = vld [vmem:[%s1390_s2 + $0x2c] ss:$16 sps:$4 sm:$0xff] (!%p248_p10)  }
  0x11   : > { %560 = vmatpush1.bf16.msra.mxu0 (!%p248_p10), %v984_v1  ;;  %603 = vmatpush1.bf16.msra.mxu1 (!%p248_p10), %v987_v4  ;;  %v993_v8 = vld [vmem:[%s1390_s2 + $0x28] ss:$16 sps:$4 sm:$0xff] (!%p248_p10)   ;;  %v994_v9 = vld [vmem:[%s1390_s2 + $0x44] ss:$16 sps:$4 sm:$0xff] (!%p248_p10)   ;;  %v996_v10 = vld [vmem:[%s1390_s2 + $0x40] ss:$16 sps:$4 sm:$0xff] (!%p248_p10)  }
  0x12   : > { %561 = vmatprep.subr.bf16.mxu0 (!%p248_p10), %v988_v5  ;;  %604 = vmatprep.subr.bf16.mxu1 (!%p248_p10), %v991_v7  ;;  %v997_v11 = vld [vmem:[%s1390_s2 + $0x4c] ss:$16 sps:$4 sm:$0xff] (!%p248_p10)   ;;  %v1000_v12 = vld [vmem:[%s1390_s2 + $0x64] ss:$16 sps:$4 sm:$0xff] (!%p248_p10)   ;;  %v999_v13 = vld [vmem:[%s1390_s2 + $0x48] ss:$16 sps:$4 sm:$0xff] (!%p248_p10)  }
  0x13   : > { %v1003_v14 = vld [vmem:[%s1390_s2 + $0x6c] ss:$16 sps:$4 sm:$0xff] (!%p248_p10)   ;;  %v1002_v15 = vld [vmem:[%s1390_s2 + $0x60] ss:$16 sps:$4 sm:$0xff] (!%p248_p10)   ;;  %v1006_v16 = vld [vmem:[%s1390_s2 + $0x84] ss:$16 sps:$4 sm:$0xff] (!%p248_p10)  }
  0x14   : > { %v1005_v17 = vld [vmem:[%s1390_s2 + $0x68] ss:$16 sps:$4 sm:$0xff] (!%p248_p10)   ;;  %v1009_v18 = vld [vmem:[%s1390_s2 + $0x8c] ss:$16 sps:$4 sm:$0xff] (!%p248_p10)   ;;  %v1008_v19 = vld [vmem:[%s1390_s2 + $0x80] ss:$16 sps:$4 sm:$0xff] (!%p248_p10)  }
  0x15   : > { %562 = vmatpush1.bf16.msra.mxu0 (!%p248_p10), %v990_v6  ;;  %605 = vmatpush1.bf16.msra.mxu1 (!%p248_p10), %v993_v8  ;;  %v1012_v20 = vld [vmem:[%s1390_s2 + $0xa4] ss:$16 sps:$4 sm:$0xff] (!%p248_p10)   ;;  %v1011_v21 = vld [vmem:[%s1390_s2 + $0x88] ss:$16 sps:$4 sm:$0xff] (!%p248_p10)   ;;  %v1015_v22 = vld [vmem:[%s1390_s2 + $0xac] ss:$16 sps:$4 sm:$0xff] (!%p248_p10)  }
  0x16   : > { %563 = vmatprep.subr.bf16.mxu0 %v994_v9  ;;  %606 = vmatprep.subr.bf16.mxu1 %v997_v11  ;;  %s1404_s10 = smov (!%p301_p11, %s870_s10), 3  ;;  %v1014_v23 = vld [vmem:[%s1390_s2 + $0xa0] ss:$16 sps:$4 sm:$0xff]   ;;  %v1018_v24 = vld [vmem:[%s1390_s2 + $0xc4] ss:$16 sps:$4 sm:$0xff]   ;;  %v374_v35 = vshrl.u32 %v373_v34, 7 }
  0x17   : > { %s871_s29 = sshll.u32 %s1404_s10, 2  ;;  %v1017_v25 = vld [vmem:[%s1390_s2 + $0xa8] ss:$16 sps:$4 sm:$0xff]   ;;  %v1021_v26 = vld [vmem:[%s1390_s2 + $0xcc] ss:$16 sps:$4 sm:$0xff]   ;;  %s287_s13 = sand.u32 1, %s1113_s19  }
  0x18   : > { %s304_s16 = scalar_lea.vmem %s1388_s0, %s871_s29  ;;  %v1020_v27 = vld [vmem:[%s1390_s2 + $0xc0] ss:$16 sps:$4 sm:$0xff]   ;;  %v1024_v28 = vld [vmem:[%s1390_s2 + $0xe4] ss:$16 sps:$4 sm:$0xff]   ;;  %v1023_v29 = vld [vmem:[%s1390_s2 + $0xc8] ss:$16 sps:$4 sm:$0xff]  }
  0x19   : > { %564 = vmatpush1.bf16.msra.mxu0 %v996_v10  ;;  %607 = vmatpush1.bf16.msra.mxu1 %v999_v13  ;;  %v1027_v30 = vld [vmem:[%s1390_s2 + $0xec] ss:$16 sps:$4 sm:$0xff]   ;;  %v1026_v31 = vld [vmem:[%s1390_s2 + $0xe0] ss:$16 sps:$4 sm:$0xff]   ;;  %v1029_v32 = vld [vmem:[%s1390_s2 + $0xe8] ss:$16 sps:$4 sm:$0xff]  }
  0x1a   : > { %565 = vmatprep.subr.bf16.mxu0 %v1000_v12  ;;  %608 = vmatprep.subr.bf16.mxu1 %v1003_v14  ;;  %v1030_v33 = vld [vmem:[%s304_s16] sm:$0xff]   ;;  %v375_v36 = vsub.s32 0, %v374_v35  ;;  %v379_v38 = vsub.s32 1, %v374_v35  ;;  %v383_v39 = vsub.s32 2, %v374_v35  ;;  %v387_v52 = vsub.s32 3, %v374_v35  ;;  %s873_s16 = sshll.u32 %s1404_s10, 3 }
  0x1b   : > { %v371_v37 = vld [vmem:[%s1391_s3] sm:$0xf]  ;;  %s313_s11 = scalar_lea.vmem %s1389_s1, %s873_s16  ;;  %s334_s12 = scalar_lea.vmem %s1393_s5, %s873_s16 }
  0x1c   : > { %v376_v40 = vrot.slane %v371_v37, %v375_v36  ;;  %v380_v41 = vrot.slane %v371_v37, %v379_v38  ;;  %v384_v42 = vrot.slane %v371_v37, %v383_v39  ;;  %v388_v57 = vrot.slane %v371_v37, %v387_v52  ;;  %v665_v1 = vld [vmem:[%s313_s11] sm:$0xff]  ;;  %v666_v8 = vld [vmem:[%s313_s11 + $0x8] sm:$0xff]  ;;  %s869_s14 = sshll.u32 %s287_s13, 3  ;;  %s918_s15 = sshll.u32 %s1121_s21, 7 }
  0x1d   : > { %566 = vmatpush1.bf16.msra.mxu0 %v1002_v15  ;;  %609 = vmatpush1.bf16.msra.mxu1 %v1005_v17  ;;  %s289_s17 = scalar_lea.vmem [#allocation2], %s869_s14  ;;  %s1338_s7 = scalar_lea.hbm %s1392_s4, %s918_s15 }
  0x1e   : > { %567 = vmatprep.subr.bf16.mxu0 %v1006_v16  ;;  %610 = vmatprep.subr.bf16.mxu1 %v1009_v18  ;;  %s712_s24 = sshll.u32 %s289_s17, 4  ;;  %s1342_s16 = scalar_lea.sflag [#allocation3], %s287_s13  ;;  %s1340_s24 = int_to_ptr.vmem [resolvable:$true] %s712_s24 }
  0x1f   : > { %s1051_s8 = scalar_lea.vmem %s1340_s24, 128  ;;  %s1132_s21 = smov [#allocation2]  }
  0x20   : > { %p1052_p12 = scmp.ne.s32.totalorder %s1340_s24, %s1051_s8  ;;  %s1055_s9 = sshll.u32 %s1132_s21, 4  ;;  %s1056_s9 = int_to_ptr.vmem [resolvable:$false] %s1055_s9 }
  0x21   : > { %568 = vmatpush1.bf16.msra.mxu0 %v1008_v19  ;;  %611 = vmatpush1.bf16.msra.mxu1 %v1011_v21  ;;  %s1057_s11 = scalar_lea.vmem %s1056_s9, 256  ;;  %p1058_p1 = scmp.lt.s32.totalorder %s1340_s24, %s1056_s9 }
  0x22   : > { %569 = vmatprep.subr.bf16.mxu0 %v1012_v20  ;;  %612 = vmatprep.subr.bf16.mxu1 %v1015_v22  ;;  %p1053_p13 = pnand %p1052_p12, %p1205_p4  ;;  %p1059_p2 = scmp.lt.s32.totalorder %s1057_s11, %s1051_s8 }
  0x24   : > { %p1054_p0 = pneg %p1053_p13  ;;  %p1060_p3 = por %p1059_p2, %p1058_p1 }
  0x25   : > { %570 = vmatpush1.bf16.msra.mxu0 %v1014_v23  ;;  %613 = vmatpush1.bf16.msra.mxu1 %v1017_v25 }
  0x26   : > { %571 = vmatprep.subr.bf16.mxu0 %v1018_v24  ;;  %614 = vmatprep.subr.bf16.mxu1 %v1021_v26  ;;  %p1061_p5 = pnand %p1060_p3, %p1054_p0 }
  0x29   : > { %572 = vmatpush1.bf16.msra.mxu0 %v1020_v27  ;;  %615 = vmatpush1.bf16.msra.mxu1 %v1023_v29 }
  0x2a   : > { %573 = vmatprep.subr.bf16.mxu0 %v1024_v28  ;;  %616 = vmatprep.subr.bf16.mxu1 %v1027_v30 }
  0x2d   : > { %574 = vmatpush1.bf16.msra.mxu0 %v1026_v31  ;;  %617 = vmatpush1.bf16.msra.mxu1 %v1029_v32 }
  0x30   : > { %592 = vmatmul.mubr.bf16.vlgmr.msra.gmra.mrb[0].mxu0 %v1030_v33  ;;  %635 = vmatmul.mubr.bf16.vlgmr.msra.gmra.mrb[0].mxu1 %v1030_v33 }
 0x103   : > { %v593_v43 = vpop.f32.mrb[0].mxu0  ;;  %v636_v48 = vpop.f32.mrb[0].mxu1 }
 0x104   : > { %v594_v44 = vadd.f32 %v593_v43, %v376_v40  ;;  %v595_v45 = vpop.f32.mrb[1].mxu0  ;;  %v637_v50 = vadd.f32 %v636_v48, %v384_v42  ;;  %v638_v53 = vpop.f32.mrb[1].mxu1 }
 0x105   : > { %v596_v46 = vadd.f32 %v595_v45, %v380_v41  ;;  %v597_v47 = vpop.f32.mrb[2].mxu0  ;;  %v640_v55 = vpop.f32.mrb[2].mxu1  ;;  %v639_v59 = vadd.f32 %v638_v53, %v388_v57 }
 0x106   : > { %1031 = vtanh.f32 %v594_v44  ;;  %v598_v49 = vadd.f32 %v597_v47, %v376_v40  ;;  %v599_v51 = vpop.f32.mrb[3].mxu0  ;;  %v642_v56 = vpop.f32.mrb[3].mxu1  ;;  %v641_v58 = vadd.f32 %v640_v55, %v384_v42 }
 0x107   : > { %1033 = vtanh.f32 %v596_v46  ;;  %v600_v54 = vadd.f32 %v599_v51, %v380_v41  ;;  %v643_v63 = vadd.f32 %v642_v56, %v388_v57 }
 0x108   : > { %1035 = vtanh.f32 %v598_v49 }
 0x109   : > { %1037 = vtanh.f32 %v637_v50 }
 0x10a   : > { %1039 = vtanh.f32 %v600_v54 }
 0x10b   : > { %1041 = vtanh.f32 %v641_v58 }
 0x10c   : > { %1043 = vtanh.f32 %v639_v59 }
 0x10d   : > { %1045 = vtanh.f32 %v643_v63 }
 0x110   : > { %v1032_v60 = vpop.eup %1031 }
 0x111   : > { %v1034_v61 = vpop.eup %1033  ;;  %v647_v62 = vadd.f32 1.0, %v1032_v60 }
 0x112   : > { %v1036_v0 = vpop.eup %1035  ;;  %v653_v2 = vadd.f32 1.0, %v1034_v61 }
 0x113   : > { %v1038_v3 = vpop.eup %1037  ;;  %v649_v4 = vmul.f32 0.5, %v647_v62  ;;  %v648_v5 = vadd.f32 1.0, %v1036_v0 }
 0x114   : > { %v1040_v6 = vpop.eup %1039  ;;  %v655_v7 = vmul.f32 0.5, %v653_v2 }
 0x115   : > { %v667_v9 = vmul.f32 %v665_v1, %v649_v4  ;;  %v650_v10 = vmul.f32 0.5, %v648_v5  ;;  %v654_v11 = vadd.f32 1.0, %v1040_v6  ;;  %v1042_v15 = vpop.eup %1041 }
 0x116   : > { %v669_v12 = vmul.f32 %v1038_v3, %v655_v7  ;;  %v1044_v19 = vpop.eup %1043 }
 0x117   : > { %v668_v13 = vmul.f32 %v666_v8, %v650_v10  ;;  %v656_v14 = vmul.f32 0.5, %v654_v11  ;;  %v1046_v20 = vpop.eup %1045  ;;  %v661_v21 = vadd.f32 1.0, %v1044_v19 }
 0x118   : > { %v671_v16 = vadd.f32 %v669_v12, %v667_v9  ;;  %v662_v22 = vadd.f32 1.0, %v1046_v20 }
 0x119   : > { %v670_v17 = vmul.f32 %v1042_v15, %v656_v14  ;;  %v663_v23 = vmul.f32 0.5, %v661_v21 }
 0x11a   : > { %673 = vst [vmem:[%s334_s12] sm:$0xff] %v671_v16  ;;  %1047 = vtanh.f32 %v671_v16  ;;  %v664_v26 = vmul.f32 0.5, %v662_v22 }
 0x11b   : > { %v672_v18 = vadd.f32 %v670_v17, %v668_v13 }
 0x11d   : > { %674 = vst [vmem:[%s334_s12 + $0x8] sm:$0xff] %v672_v18  ;;  %1049 = vtanh.f32 %v672_v18 }
 0x124   : > { %v1048_v24 = vpop.eup %1047 }
 0x125   : > { %v677_v25 = vmul.f32 %v1048_v24, %v663_v23 }
 0x127   : > { %v1050_v27 = vpop.eup %1049 }
 0x128   : > { %v678_v28 = vmul.f32 %v1050_v27, %v664_v26 }
 0x12a   : > { %v922_v29 = vpack.c.bf16 %v678_v28, %v677_v25 }
 0x12c   : > { %923 = vst [vmem:[%s289_s17] sm:$0xff] %v922_v29  }
 0x12d   : > { %1064 = shalt.err (!%p1061_p5)
}
 0x12e   : > { %s1065_s10 = scalar_lea.hbm %s1338_s7, 128  ;;  %s1069_s13 = scalar_lea.hbm %s1392_s4, 256 }
 0x12f   : > { %p1066_p6 = scmp.ne.s32.totalorder %s1338_s7, %s1065_s10  ;;  %p1070_p10 = scmp.lt.u32.totalorder %s1338_s7, %s1392_s4 }
 0x130   : > { %p1071_p11 = scmp.lt.u32.totalorder %s1069_s13, %s1065_s10  ;;  %p1073_p13 = scmp.lt.u32.totalorder %s1065_s10, %s1338_s7 }
 0x131   : > { %p1067_p7 = pnand %p1066_p6, %p1205_p4 }
 0x132   : > { %p1072_p12 = por %p1071_p11, %p1070_p10 }
 0x133   : > { %p1068_p9 = pneg %p1067_p7 }
 0x134   : > { %p1074_p0 = por %p1073_p13, %p1072_p12 }
 0x136   : > { %p1075_p1 = pnand %p1074_p0, %p1068_p9 }
 0x138   : > { %1078 = shalt.err (!%p1075_p1)
}
 0x139   : > { %s1133_s17 = smov 64   ;;  %s1134_s25 = smov 4  }
 0x13a   : > { %924 = dma.vmem_to_hbm [thread:$0]  (%p1205_p4), %s1340_s24, 128, %s1338_s7, %s1342_s16, %s1133_s17, %s1133_s17, %s1134_s25  }
 0x13b PF: > { %p930_p2 = scmp.ge.s32.totalorder %s1129_s23, 2  ;;  %s731_s27 = sand.u32 1, %s1109_s18  }
 0x13c   : > { %s732_s8 = scalar_lea.sflag [#allocation3], %s731_s27 }
 0x13d   : > { %p927_p3 = pnand %p930_p2, %p1212_p8 }
 0x13f   : > { %1104 = dma.done.wait (!%p927_p3), %s732_s8, 128  }
 0x140   : > { %1106 = vsyncadd (!%p927_p3), %s732_s8, 4294967168  ;;  %s19_s23 = sadd.s32 1, %s1129_s23   ;;  %s1396_s18 = smov %s1113_s19 }
 0x141   : > { %p16_p5 = scmp.ge.s32.totalorder %s19_s23, 4   ;;  %s1397_s19 = smov %s1117_s20 }
 0x142   : > { %s1398_s20 = smov %s1218_s6  ;;  %s1399_s21 = smov %s1125_s22 }
 0x143   : > { %s1400_s22 = smov %s1402_s26  ;;  %18 = sbr.rel (!%p16_p5) target bundleno = 4 (0x4), region = 92 }
 0x14a   :  { %748 = vsyncpa [#allocation3], 1 }
 0x14b   :  { %750 = vsyncpa [#allocation3 + $0x1], 1 }

</bundles_post_ra>
